<compile_context>
chip_gen: v6e
topology: v6e:2x2x1
jax: 0.10.0
libtpu: 0.0.40
codegen_flags: <defaults>
</compile_context>

<pallas_src>
import numpy as np
import jax
import jax.numpy as jnp
from jax.experimental import pallas as pl
from jax.experimental.pallas import tpu as pltpu

WINDOW_SIZES = (2, 3, 4)
NW = len(WINDOW_SIZES)
MAXW = max(WINDOW_SIZES)              # 4
PAD = MAXW - 1                        # 3 shared leading zero rows

_SLAB_BLOCK_BUDGET_BYTES = 4 * 1024 * 1024   # per-step input block (double-buffered)


def _round_up(x, m):
    return (x + m - 1) // m * m


def _make_kernel(M_chunk, TB, K_pad, NC_pad):
    """One grid step: TB samples x M_chunk conv positions.

    Single MXU matmul fusing all taps & window sizes, fused bias+mask+ReLU,
    then a running global max-pool into the resident output block.
    """

    def kernel(slab_ref, w_ref, bm_ref, o_ref):
        mi = pl.program_id(1)

        # (M_chunk, TB, K_pad) -> (M_chunk*TB, K_pad): free re-view (TB % 8 == 0).
        rows = slab_ref[...].reshape(M_chunk * TB, K_pad)

        # One lane-dense MXU matmul for all 3 window sizes (f32 accumulation).
        y = jnp.dot(rows, w_ref[...], preferred_element_type=jnp.float32)

        # bias + validity mask + ReLU in a single add/max pair.  bm[m, col] is
        # the column's bias where (position m, window of col) is valid and
        # -1e30 otherwise; the matmul contribution at invalid entries is
        # exactly 0 (zero-padded x), so ReLU clamps them to 0 (= max identity).
        y = y.reshape(M_chunk, TB, NC_pad)
        y = jnp.maximum(y + bm_ref[...][:, None, :], 0.0)

        # Global max-pool over this chunk's conv positions (leading axis =>
        # pairwise VPU maxima, short dependency chain, no XLU).
        cmax = jnp.max(y, axis=0)

        @pl.when(mi == 0)
        def _():
            o_ref[...] = cmax

        @pl.when(mi > 0)
        def _():
            o_ref[...] = jnp.maximum(o_ref[...], cmax)

    return kernel


def _pick_batch_tiling(B, max_batch_tile=256):
    """Batch tile TB (multiple of 8) and #tiles nb; minimizes padding while
    keeping >= 2 tiles whenever B >= 16 (v7x megacore + DMA/compute overlap)."""
    B8 = _round_up(max(B, 1), 8)
    if B8 <= 8:
        return 8, 1
    nb = max(2, -(-B8 // max_batch_tile))
    TB = _round_up(-(-B // nb), 8)
    return TB, nb


def cnn_encoder_forward(sent, sent_len, params, *, matmul_dtype=jnp.float32,
                        max_batch_tile=256, block_rows=None):
    """sent: (S, B, D) float32, time-major (same convention as the PyTorch module).

    Returns (B, 3*C) with columns ordered c*3 + j (PyTorch cat+view layout).
    matmul_dtype=jnp.bfloat16 runs the MXU matmul in bf16 (f32 accumulation) --
    recommended on v6e/v7x when tolerance allows.
    """
    del sent_len  # PyTorch forward ignores it (intentional).
    S, B, D = sent.shape
    C = params["bias"].shape[1]
    NC = NW * C
    NC_pad = _round_up(NC, 128)        # lane-dense matmul N / output
    K = MAXW * D
    K_pad = _round_up(K, 128)          # lane-dense matmul K

    TB, nb = _pick_batch_tiling(B, max_batch_tile)
    B_pad = TB * nb

    # Conv positions in the unified indexing (PAD leading zeros): window w is
    # valid at m in [MAXW - w, S + MAXW - 2].
    M = S + MAXW - 1
    last_valid = S + MAXW - 2

    # Chunk the conv-position axis so the per-step slab block stays ~4 MiB.
    itemsize = jnp.dtype(matmul_dtype).itemsize
    if block_rows is None:
        rows_budget = _SLAB_BLOCK_BUDGET_BYTES // (K_pad * itemsize * TB)
        M_chunk = max(8, min(rows_budget // 8 * 8, _round_up(M, 8)))
    else:
        M_chunk = max(8, _round_up(block_rows, 8))
    M_pad = _round_up(M, M_chunk)
    nm = M_pad // M_chunk

    # ---- wrapper-side im2col: lane-dense (M_pad, B_pad, K_pad) slab ----------
    x = sent.astype(matmul_dtype)
    xp = jnp.pad(x, ((PAD, (M_pad + MAXW - 1) - PAD - S), (0, B_pad - B), (0, 0)))
    # slab[m, b, k*D + d] = x_padded[m + k, b, d]   (position-major rows)
    slab = jnp.concatenate([xp[k:k + M_pad] for k in range(MAXW)], axis=-1)
    if K_pad != K:
        slab = jnp.pad(slab, ((0, 0), (0, 0), (0, K_pad - K)))

    # ---- packed weights: row = k*D + d, col = c*NW + j (PyTorch layout) ------
    w_pack = jnp.zeros((MAXW, D, C, NW), matmul_dtype)
    for j, w in enumerate(WINDOW_SIZES):
        w_pack = w_pack.at[:w, :, :, j].set(params[f"w{w}"].astype(matmul_dtype))
    w_pack = w_pack.reshape(K, NC)
    w_pack = jnp.pad(w_pack, ((0, K_pad - K), (0, NC_pad - NC)))

    # ---- bias-or-(-inf) validity mask, shape (M_pad, NC_pad), always f32 -----
    ws = np.asarray(WINDOW_SIZES)                                   # (NW,)
    m_idx = np.arange(M_pad)[:, None]                               # (M_pad, 1)
    valid_mj = (m_idx >= (MAXW - ws)[None, :]) & (m_idx <= last_valid)
    valid = np.repeat(valid_mj[:, None, :], C, axis=1).reshape(M_pad, NC)
    bias_row = jnp.transpose(params["bias"].astype(jnp.float32)).reshape(1, NC)
    bm = jnp.where(jnp.asarray(valid), bias_row, jnp.float32(-1e30))
    bm = jnp.pad(bm, ((0, 0), (0, NC_pad - NC)), constant_values=-1e30)

    kernel = _make_kernel(M_chunk, TB, K_pad, NC_pad)
    out = pl.pallas_call(
        kernel,
        out_shape=jax.ShapeDtypeStruct((B_pad, NC_pad), jnp.float32),
        grid=(nb, nm),                          # batch parallel, reduction axis last
        in_specs=[
            pl.BlockSpec((M_chunk, TB, K_pad), lambda b, m: (m, b, 0)),
            pl.BlockSpec((K_pad, NC_pad), lambda b, m: (0, 0)),
            pl.BlockSpec((M_chunk, NC_pad), lambda b, m: (m, 0)),
        ],
        out_specs=pl.BlockSpec((TB, NC_pad), lambda b, m: (b, 0)),
        compiler_params=pltpu.CompilerParams(
            dimension_semantics=("parallel", "arbitrary")),
    )(slab, w_pack, bm)

    # Columns already in PyTorch's [c0_w2, c0_w3, c0_w4, c1_w2, ...] order.
    return out[:B, :NC]


def cnn_encoder_reference(sent, params):
    """Pure-JAX reference mirroring the PyTorch forward exactly."""
    S, B, D = sent.shape
    x = jnp.transpose(sent, (1, 0, 2))
    pooled = []
    for j, w in enumerate(WINDOW_SIZES):
        wt = params[f"w{w}"]                        # (w, D, C)
        bias = params["bias"][j]                    # (C,)
        xp = jnp.pad(x, ((0, 0), (w - 1, w - 1), (0, 0)))
        L = S + w - 1
        conv = jnp.zeros((B, L, wt.shape[2]), jnp.float32)
        for k in range(w):
            conv = conv + jnp.einsum("bld,dc->blc", xp[:, k:k + L, :], wt[k])
        conv = jax.nn.relu(conv + bias[None, None, :])
        pooled.append(jnp.max(conv, axis=1))        # (B, C)
    stacked = jnp.stack(pooled, axis=-1)            # (B, C, NW)
    return stacked.reshape(B, -1)


if __name__ == "__main__":
    # Small shapes consistent with the module: bsize=2, seq_len=8,
    # word_emb_dim=32, enc_hidden_dim=32, window_sizes=[2,3,4].
    B, S, D, C = 2, 8, 32, 32

    key = jax.random.PRNGKey(0)
    k_x, k_w2, k_w3, k_w4, k_b = jax.random.split(key, 5)

    sent = jax.random.normal(k_x, (S, B, D), jnp.float32)
    sent_len = jnp.full((B,), S, jnp.int32)          # unused by forward (matches PyTorch)

    # PyTorch Conv2d weight is (C, 1, w, D); stored here as (w, D, C) = weight[:, 0, k, :].T
    params = {
        "w2": 0.1 * jax.random.normal(k_w2, (2, D, C), jnp.float32),
        "w3": 0.1 * jax.random.normal(k_w3, (3, D, C), jnp.float32),
        "w4": 0.1 * jax.random.normal(k_w4, (4, D, C), jnp.float32),
        "bias": 0.1 * jax.random.normal(k_b, (NW, C), jnp.float32),
    }

    ref = jax.block_until_ready(cnn_encoder_reference(sent, params))

    # Default f32 MXU path.
    out = jax.block_until_ready(cnn_encoder_forward(sent, sent_len, params))
    assert out.shape == (B, C * NW), out.shape
    np.testing.assert_allclose(np.asarray(out), np.asarray(ref), rtol=1e-3, atol=1e-3)

    # bf16 MXU inputs (v6e/v7x fast path), f32 accumulation -> looser tolerance.
    out_bf16 = jax.block_until_ready(
        cnn_encoder_forward(sent, sent_len, params, matmul_dtype=jnp.bfloat16))
    np.testing.assert_allclose(np.asarray(out_bf16), np.asarray(ref), rtol=3e-2, atol=3e-2)

    # Exercise multi-tile paths: 2 batch tiles and a 4-chunk running max-pool.
    B2, S2 = 20, 23
    sent2 = jax.random.normal(jax.random.PRNGKey(1), (S2, B2, D), jnp.float32)
    sent_len2 = jnp.full((B2,), S2, jnp.int32)
    ref2 = jax.block_until_ready(cnn_encoder_reference(sent2, params))
    out2 = jax.block_until_ready(
        cnn_encoder_forward(sent2, sent_len2, params, block_rows=8))
    np.testing.assert_allclose(np.asarray(out2), np.asarray(ref2), rtol=1e-3, atol=1e-3)

    print("KERNEL_OK")
</pallas_src>

<mosaic_0001>
module attributes {stable_mosaic.version = 11 : i64} {
  func.func @kernel(%arg0: i32, %arg1: i32, %arg2: memref<16x8x128xf32, #tpu.memory_space<vmem>>, %arg3: memref<128x128xf32, #tpu.memory_space<vmem>>, %arg4: memref<16x128xf32, #tpu.memory_space<vmem>>, %arg5: memref<8x128xf32, #tpu.memory_space<vmem>>) attributes {dimension_semantics = [#tpu.dimension_semantics<parallel>, #tpu.dimension_semantics<arbitrary>], iteration_bounds = array<i64: 1, 1>, scalar_prefetch = 0 : i64, scratch_operands = 0 : i64, tpu.core_type = #tpu.core_type<tc>, window_params = [{transform_indices = @transform_0, window_bounds = array<i64: 16, 8, 128>}, {pipeline_mode = #tpu.pipeline_mode<synchronous>, transform_indices = @transform_1, window_bounds = array<i64: 128, 128>}, {transform_indices = @transform_2, window_bounds = array<i64: 16, 128>}, {transform_indices = @transform_3, window_bounds = array<i64: 8, 128>}]} {
    %c0 = arith.constant 0 : index
    %c0_0 = arith.constant 0 : index
    %c0_1 = arith.constant 0 : index
    %0 = vector.load %arg2[%c0, %c0_0, %c0_1] : memref<16x8x128xf32, #tpu.memory_space<vmem>>, vector<16x8x128xf32>
    %1 = vector.shape_cast %0 : vector<16x8x128xf32> to vector<128x128xf32>
    %c0_2 = arith.constant 0 : index
    %c0_3 = arith.constant 0 : index
    %2 = vector.load %arg3[%c0_2, %c0_3] : memref<128x128xf32, #tpu.memory_space<vmem>>, vector<128x128xf32>
    %cst = arith.constant dense<0.000000e+00> : vector<128x128xf32>
    %3 = tpu.matmul %1, %2, %cst {dimension_numbers = #tpu.dot_dimension_numbers<[1], [0], [0], [1], [0, 0, 1, 1], [], []>} : vector<128x128xf32>, vector<128x128xf32>, vector<128x128xf32> -> vector<128x128xf32>
    %4 = vector.shape_cast %3 : vector<128x128xf32> to vector<16x8x128xf32>
    %c0_4 = arith.constant 0 : index
    %c0_5 = arith.constant 0 : index
    %5 = vector.load %arg4[%c0_4, %c0_5] : memref<16x128xf32, #tpu.memory_space<vmem>>, vector<16x128xf32>
    %6 = vector.shape_cast %5 : vector<16x128xf32> to vector<16x1x128xf32>
    %7 = vector.broadcast %6 : vector<16x1x128xf32> to vector<16x8x128xf32>
    %8 = arith.addf %4, %7 : vector<16x8x128xf32>
    %cst_6 = arith.constant 0.000000e+00 : f32
    %9 = vector.broadcast %cst_6 : f32 to vector<16x8x128xf32>
    %10 = arith.maximumf %8, %9 : vector<16x8x128xf32>
    %cst_7 = arith.constant dense<0xFF800000> : vector<8x128xf32>
    %11 = vector.multi_reduction <maximumf>, %10, %cst_7 [0] : vector<16x8x128xf32> to vector<8x128xf32>
    %c0_i32 = arith.constant 0 : i32
    %12 = arith.cmpi eq, %arg1, %c0_i32 : i32
    %13 = arith.extui %12 : i1 to i32
    %c0_i32_8 = arith.constant 0 : i32
    %14 = arith.cmpi ne, %13, %c0_i32_8 : i32
    scf.if %14 {
      %c0_11 = arith.constant 0 : index
      %c0_12 = arith.constant 0 : index
      %18 = vector.load %arg5[%c0_11, %c0_12] : memref<8x128xf32, #tpu.memory_space<vmem>>, vector<8x128xf32>
      tpu.vector_store %arg5[%c0_11, %c0_12], %11 {strides = array<i32>} : memref<8x128xf32, #tpu.memory_space<vmem>>, vector<8x128xf32>,
    } else {
    }
    %c0_i32_9 = arith.constant 0 : i32
    %15 = arith.cmpi sgt, %arg1, %c0_i32_9 : i32
    %16 = arith.extui %15 : i1 to i32
    %c0_i32_10 = arith.constant 0 : i32
    %17 = arith.cmpi ne, %16, %c0_i32_10 : i32
    scf.if %17 {
      %c0_11 = arith.constant 0 : index
      %c0_12 = arith.constant 0 : index
      %18 = vector.load %arg5[%c0_11, %c0_12] : memref<8x128xf32, #tpu.memory_space<vmem>>, vector<8x128xf32>
      %19 = arith.maximumf %18, %11 : vector<8x128xf32>
      %c0_13 = arith.constant 0 : index
      %c0_14 = arith.constant 0 : index
      %20 = vector.load %arg5[%c0_13, %c0_14] : memref<8x128xf32, #tpu.memory_space<vmem>>, vector<8x128xf32>
      tpu.vector_store %arg5[%c0_13, %c0_14], %19 {strides = array<i32>} : memref<8x128xf32, #tpu.memory_space<vmem>>, vector<8x128xf32>,
    } else {
    }
    return
  }
  func.func @transform_0(%arg0: i32, %arg1: i32) -> (i32, i32, i32) {
    %c0_i32 = arith.constant 0 : i32
    %c0_i32_0 = arith.constant 0 : i32
    return %arg1, %arg0, %c0_i32 : i32, i32, i32
  }
  func.func @transform_1(%arg0: i32, %arg1: i32) -> (i32, i32) {
    %c0_i32 = arith.constant 0 : i32
    %c0_i32_0 = arith.constant 0 : i32
    %c0_i32_1 = arith.constant 0 : i32
    return %c0_i32, %c0_i32_0 : i32, i32
  }
  func.func @transform_2(%arg0: i32, %arg1: i32) -> (i32, i32) {
    %c0_i32 = arith.constant 0 : i32
    %c0_i32_0 = arith.constant 0 : i32
    return %arg1, %c0_i32 : i32, i32
  }
  func.func @transform_3(%arg0: i32, %arg1: i32) -> (i32, i32) {
    %c0_i32 = arith.constant 0 : i32
    %c0_i32_0 = arith.constant 0 : i32
    return %arg0, %c0_i32 : i32, i32
  }
}

</mosaic_0001>

<bundles_post_ra>
// kernel: tpu_custom_call.1
= control target key start
LH: loop header
LB: loop body
LE: loop exit
PB: predicated region body
PF: predicated region fallthrough
CT: control target
= control target key end

     0   :  { %8 = vsyncpa [#allocation3], 0  ;;  %s762_s0 = inlined_call_operand.hbm [shape: f32[16,8,128], index: 0, kind: input, shape index: {}]   ;;  %s763_s1 = inlined_call_operand.hbm [shape: f32[128,128], index: 1, kind: input, shape index: {}]   ;;  %s764_s2 = inlined_call_operand.hbm [shape: f32[16,128], index: 2, kind: input, shape index: {}]   ;;  %s765_s3 = inlined_call_operand.hbm [shape: f32[8,128], index: 3, kind: output, shape index: {}]  }
   0x1   :  { %9 = vsyncpa [#allocation6], 0 }
   0x2   :  { %10 = vsyncpa [#allocation4], 0  ;;  %s705_s12 = smov [#allocation5]   ;;  %s706_s14 = smov [#allocation2]  }
   0x3   :  { %s28_s13 = sshll.u32 %s705_s12, 4  ;;  %s16_s15 = sshll.u32 %s706_s14, 4  ;;  %s29_s13 = int_to_ptr.vmem [resolvable:$true] %s28_s13  ;;  %s17_s15 = int_to_ptr.vmem [resolvable:$true] %s16_s15 }
   0x4   :  { %s627_s16 = scalar_lea.vmem %s29_s13, 2048  ;;  %p632_p1 = scmp.lt.s32.totalorder %s29_s13, %s29_s13 }
   0x5   :  { %p628_p0 = scmp.ne.s32.totalorder %s29_s13, %s627_s16  ;;  %p633_p2 = scmp.lt.s32.totalorder %s627_s16, %s627_s16 }
   0x7   :  { %p634_p3 = por %p633_p2, %p632_p1 }
   0x9   :  { %p635_p4 = pnand %p634_p3, %p628_p0 }
   0xb   :  { %638 = shalt.err (!%p635_p4)
}
   0xc   :  { %s707_s17 = smov 128   ;;  %s708_s18 = smov 8  }
   0xd   :  { %34 = dma.hbm_to_vmem [thread:$0]  %s763_s1, 2048, %s29_s13, [#allocation6], %s707_s17, %s707_s17, %s708_s18  }
   0xe   :  { %s647_s21 = scalar_lea.vmem %s17_s15, 2048  ;;  %p652_p6 = scmp.lt.s32.totalorder %s17_s15, %s17_s15 }
   0xf   :  { %p648_p5 = scmp.ne.s32.totalorder %s17_s15, %s647_s21  ;;  %p653_p7 = scmp.lt.s32.totalorder %s647_s21, %s647_s21 }
  0x11   :  { %p654_p8 = por %p653_p7, %p652_p6 }
  0x13   :  { %p655_p9 = pnand %p654_p8, %p648_p5 }
  0x15   :  { %658 = shalt.err (!%p655_p9)
}
  0x16   :  { %22 = dma.hbm_to_vmem [thread:$0]  %s762_s0, 2048, %s17_s15, [#allocation3], %s707_s17, %s707_s17, %s708_s18  }
  0x17   :  { %s709_s24 = smov [#allocation7]  }
  0x18   :  { %s40_s25 = sshll.u32 %s709_s24, 4  ;;  %s41_s25 = int_to_ptr.vmem [resolvable:$true] %s40_s25 }
  0x19   :  { %s667_s26 = scalar_lea.vmem %s41_s25, 256  ;;  %p672_p11 = scmp.lt.s32.totalorder %s41_s25, %s41_s25 }
  0x1a   :  { %p668_p10 = scmp.ne.s32.totalorder %s41_s25, %s667_s26  ;;  %p673_p12 = scmp.lt.s32.totalorder %s667_s26, %s667_s26 }
  0x1c   :  { %p674_p13 = por %p673_p12, %p672_p11 }
  0x1e   :  { %p675_p0 = pnand %p674_p13, %p668_p10 }
  0x20   :  { %678 = shalt.err (!%p675_p0)
}
  0x21   :  { %46 = dma.hbm_to_vmem [thread:$0]  %s764_s2, 256, %s41_s25, [#allocation6], %s707_s17, %s707_s17, %s708_s18  }
  0x22   :  { %699 = dma.done.wait [#allocation3], 2048  }
  0x23   :  { %700 = vsyncadd [#allocation3], 4294965248 }
  0x24   :  { %701 = dma.done.wait [#allocation6], 2304  }
  0x25   :  { %702 = vsyncadd [#allocation6], 4294964992  ;;  %v87_v0 = vld [vmem:[#allocation5 + $0x78] sm:$0xff]  ;;  %v86_v1 = vld [vmem:[#allocation5 + $0x70] sm:$0xff]  ;;  %v710_v32 = vmov 1966171168   ;;  %v241_v34 = vlaneseq }
  0x26   :  { %522 = vmatprep.subr.mxu0 %v87_v0  ;;  %578 = vmatprep.subr.mxu1 %v87_v0  ;;  %v85_v2 = vld [vmem:[#allocation5 + $0x68] sm:$0xff]  ;;  %v84_v3 = vld [vmem:[#allocation5 + $0x60] sm:$0xff]  ;;  %v83_v4 = vld [vmem:[#allocation5 + $0x58] sm:$0xff]  ;;  %v239_v33 = vunpack.c.l.s4 %v710_v32  ;;  %s711_s0 = smov [#allocation8]  }
  0x27   :  { %523 = vmatpush3.msra.mxu0 %v87_v0  ;;  %594 = vmatpush3.msra.mxu1 %v87_v0  ;;  %v82_v5 = vld [vmem:[#allocation5 + $0x50] sm:$0xff]  ;;  %v81_v6 = vld [vmem:[#allocation5 + $0x48] sm:$0xff]  ;;  %v80_v7 = vld [vmem:[#allocation5 + $0x40] sm:$0xff]  ;;  %v242_v36 = vshrl.u32 %v241_v34, 7  ;;  %s480_s2 = sshll.u32 %s711_s0, 4  ;;  %s481_s2 = int_to_ptr.vmem [resolvable:$true] %s480_s2 }
  0x28   :  { %524 = vmatprep.subr.mxu0 %v86_v1  ;;  %579 = vmatprep.subr.mxu1 %v86_v1  ;;  %v79_v8 = vld [vmem:[#allocation5 + $0x38] sm:$0xff]  ;;  %v78_v9 = vld [vmem:[#allocation5 + $0x30] sm:$0xff]  ;;  %v77_v10 = vld [vmem:[#allocation5 + $0x28] sm:$0xff]  ;;  %v240_v35 = vunpack.c.0.s8 %v239_v33  ;;  %s679_s28 = scalar_lea.vmem %s481_s2, 128  ;;  %p684_p2 = scmp.lt.s32.totalorder %s481_s2, %s481_s2 }
  0x29   :  { %525 = vmatpush3.msra.mxu0 %v86_v1  ;;  %595 = vmatpush3.msra.mxu1 %v86_v1  ;;  %v76_v11 = vld [vmem:[#allocation5 + $0x20] sm:$0xff]  ;;  %v75_v12 = vld [vmem:[#allocation5 + $0x18] sm:$0xff]  ;;  %v74_v13 = vld [vmem:[#allocation5 + $0x10] sm:$0xff]  ;;  %v741_v50 = vsub.s32 0, %v242_v36  ;;  %p680_p1 = scmp.ne.s32.totalorder %s481_s2, %s679_s28  ;;  %p685_p3 = scmp.lt.s32.totalorder %s679_s28, %s679_s28 }
  0x2a   :  { %526 = vmatprep.subr.mxu0 %v85_v2  ;;  %580 = vmatprep.subr.mxu1 %v85_v2  ;;  %v73_v14 = vld [vmem:[#allocation5 + $0x8] sm:$0xff]  ;;  %v72_v15 = vld [vmem:[#allocation5] sm:$0xff]  ;;  %v58_v19 = vld [vmem:[#allocation2 + $0x10] sm:$0xff]  ;;  %v243_v37 = vsub.s32 %v240_v35, %v242_v36 }
  0x2b   :  { %527 = vmatpush3.msra.mxu0 %v85_v2  ;;  %596 = vmatpush3.msra.mxu1 %v85_v2  ;;  %v56_v16 = vld [vmem:[#allocation2] sm:$0xff]  ;;  %v57_v17 = vld [vmem:[#allocation2 + $0x8] sm:$0xff]  ;;  %v66_v21 = vld [vmem:[#allocation2 + $0x50] sm:$0xff]  ;;  %p686_p4 = por %p685_p3, %p684_p2 }
  0x2c   :  { %528 = vmatprep.subr.mxu0 %v84_v3  ;;  %581 = vmatprep.subr.mxu1 %v84_v3  ;;  %v64_v18 = vld [vmem:[#allocation2 + $0x40] sm:$0xff]  ;;  %v65_v20 = vld [vmem:[#allocation2 + $0x48] sm:$0xff]  ;;  %v59_v22 = vld [vmem:[#allocation2 + $0x18] sm:$0xff] }
  0x2d   :  { %529 = vmatpush3.msra.mxu0 %v84_v3  ;;  %597 = vmatpush3.msra.mxu1 %v84_v3  ;;  %v60_v23 = vld [vmem:[#allocation2 + $0x20] sm:$0xff]  ;;  %v67_v24 = vld [vmem:[#allocation2 + $0x58] sm:$0xff]  ;;  %v61_v26 = vld [vmem:[#allocation2 + $0x28] sm:$0xff]  ;;  %p687_p5 = pnand %p686_p4, %p680_p1 }
  0x2e   :  { %530 = vmatprep.subr.mxu0 %v83_v4  ;;  %582 = vmatprep.subr.mxu1 %v83_v4  ;;  %v68_v25 = vld [vmem:[#allocation2 + $0x60] sm:$0xff]  ;;  %v62_v27 = vld [vmem:[#allocation2 + $0x30] sm:$0xff]  ;;  %v69_v28 = vld [vmem:[#allocation2 + $0x68] sm:$0xff] }
  0x2f   :  { %531 = vmatpush3.msra.mxu0 %v83_v4  ;;  %598 = vmatpush3.msra.mxu1 %v83_v4  ;;  %v70_v29 = vld [vmem:[#allocation2 + $0x70] sm:$0xff]  ;;  %v63_v30 = vld [vmem:[#allocation2 + $0x38] sm:$0xff]  ;;  %v233_v38 = vld [vmem:[#allocation7] sm:$0xff] }
  0x30   :  { %532 = vmatprep.subr.mxu0 %v82_v5  ;;  %583 = vmatprep.subr.mxu1 %v82_v5  ;;  %v71_v31 = vld [vmem:[#allocation2 + $0x78] sm:$0xff]  ;;  %v237_v39 = vcombine.high %v233_v38, %v233_v38  ;;  %v244_v40 = vrot.slane %v233_v38, %v243_v37  ;;  %v234_v41 = vld [vmem:[#allocation7 + $0x8] sm:$0xff] }
  0x31   :  { %533 = vmatpush3.msra.mxu0 %v82_v5  ;;  %599 = vmatpush3.msra.mxu1 %v82_v5  ;;  %v286_v43 = vcombine.high %v234_v41, %v234_v41  ;;  %v293_v45 = vrot.slane %v234_v41, %v243_v37 }
  0x32   :  { %534 = vmatprep.subr.mxu0 %v81_v6  ;;  %584 = vmatprep.subr.mxu1 %v81_v6  ;;  %v251_v42 = vrot.slane %v237_v39, %v243_v37  ;;  %v252_v44 = vcombine.high %v244_v40, %v244_v40  ;;  %v260_v51 = vrot.slane %v244_v40, %v243_v37 }
  0x33   :  { %535 = vmatpush3.msra.mxu0 %v81_v6  ;;  %600 = vmatpush3.msra.mxu1 %v81_v6  ;;  %v300_v47 = vrot.slane %v286_v43, %v243_v37  ;;  %v301_v49 = vcombine.high %v293_v45, %v293_v45  ;;  %v309_v59 = vrot.slane %v293_v45, %v243_v37 }
  0x34   :  { %536 = vmatprep.subr.mxu0 %v80_v7  ;;  %585 = vmatprep.subr.mxu1 %v80_v7  ;;  %v253_v46 = vcombine.high %v251_v42, %v251_v42  ;;  %v274_v48 = vrot.slane %v252_v44, %v243_v37  ;;  %v338_v61 = vrot.slane %v260_v51, %v741_v50 }
  0x35   :  { %537 = vmatpush3.msra.mxu0 %v80_v7  ;;  %601 = vmatpush3.msra.mxu1 %v80_v7  ;;  %v302_v55 = vcombine.high %v300_v47, %v300_v47  ;;  %v323_v58 = vrot.slane %v301_v49, %v243_v37  ;;  %v267_v62 = vrot.slane %v251_v42, %v243_v37 }
  0x36   :  { %538 = vmatprep.subr.mxu0 %v79_v8  ;;  %586 = vmatprep.subr.mxu1 %v79_v8  ;;  %v284_v53 = vcombine.high %v274_v48, %v274_v48  ;;  %v281_v54 = vrot.slane %v253_v46, %v243_v37  ;;  %v342_v60 = vrot.slane %v274_v48, %v741_v50 }
  0x37   :  { %539 = vmatpush3.msra.mxu0 %v79_v8  ;;  %602 = vmatpush3.msra.mxu1 %v79_v8  ;;  %v282_v2 = vcombine.high %v260_v51, %v260_v51  ;;  %v333_v3 = vcombine.high %v323_v58, %v323_v58  ;;  %v331_v4 = vcombine.high %v309_v59, %v309_v59 }
  0x38   :  { %540 = vmatprep.subr.mxu0 %v78_v9  ;;  %587 = vmatprep.subr.mxu1 %v78_v9  ;;  %v350_v0 = vrot.slane %v284_v53, %v741_v50  ;;  %v358_v5 = vrot.slane %v281_v54, %v741_v50  ;;  %v330_v6 = vrot.slane %v302_v55, %v243_v37 }
  0x39   :  { %541 = vmatpush3.msra.mxu0 %v78_v9  ;;  %603 = vmatpush3.msra.mxu1 %v78_v9  ;;  %v285_v7 = vcombine.high %v281_v54, %v281_v54  ;;  %v316_v8 = vrot.slane %v300_v47, %v243_v37  ;;  %v370_v9 = vrot.slane %v309_v59, %v741_v50 }
  0x3a   :  { %542 = vmatprep.subr.mxu0 %v77_v10  ;;  %588 = vmatprep.subr.mxu1 %v77_v10 }
  0x3b   :  { %543 = vmatpush3.msra.mxu0 %v77_v10  ;;  %604 = vmatpush3.msra.mxu1 %v77_v10 }
  0x3c   :  { %544 = vmatprep.subr.mxu0 %v76_v11  ;;  %589 = vmatprep.subr.mxu1 %v76_v11 }
  0x3d   :  { %545 = vmatpush3.msra.mxu0 %v76_v11  ;;  %605 = vmatpush3.msra.mxu1 %v76_v11 }
  0x3e   :  { %546 = vmatprep.subr.mxu0 %v75_v12  ;;  %590 = vmatprep.subr.mxu1 %v75_v12 }
  0x3f   :  { %547 = vmatpush3.msra.mxu0 %v75_v12  ;;  %606 = vmatpush3.msra.mxu1 %v75_v12  ;;  %v283_v12 = vcombine.high %v267_v62, %v267_v62 }
  0x40   :  { %548 = vmatprep.subr.mxu0 %v74_v13  ;;  %591 = vmatprep.subr.mxu1 %v74_v13 }
  0x41   :  { %549 = vmatpush3.msra.mxu0 %v74_v13  ;;  %607 = vmatpush3.msra.mxu1 %v74_v13  ;;  %v374_v13 = vrot.slane %v323_v58, %v741_v50  ;;  %v362_v32 = vrot.slane %v283_v12, %v741_v50 }
  0x42   :  { %550 = vmatprep.subr.mxu0 %v73_v14  ;;  %592 = vmatprep.subr.mxu1 %v73_v14 }
  0x43   :  { %551 = vmatpush3.msra.mxu0 %v73_v14  ;;  %608 = vmatpush3.msra.mxu1 %v73_v14  ;;  %v354_v14 = vrot.slane %v267_v62, %v741_v50 }
  0x44   :  { %552 = vmatprep.subr.mxu0 %v72_v15  ;;  %554 = vmatprep.mubr.f32.mxu0 %v56_v16  ;;  %v332_v16 = vcombine.high %v316_v8, %v316_v8 }
  0x45   :  { %553 = vmatpush3.msra.mxu0 %v72_v15  ;;  %593 = vmatprep.subr.mxu1 %v72_v15 }
  0x46   :  { %555 = vmatmul.mubr.f32.vlgmr.msra.gmra.mxu0 %v57_v17  ;;  %609 = vmatpush3.msra.mxu1 %v72_v15  ;;  %v334_v15 = vcombine.high %v330_v6, %v330_v6  ;;  %v394_v36 = vrot.slane %v332_v16, %v741_v50 }
  0x47   :  { %566 = vmatprep.mubr.f32.mxu1 %v64_v18  ;;  %557 = vmatprep.mubr.f32.mxu0 %v58_v19  ;;  %v346_v19 = vrot.slane %v282_v2, %v741_v50 }
  0x48   :  { %567 = vmatmul.mubr.f32.vlgmr.msra.gmra.mxu1 %v65_v20  ;;  %v382_v20 = vrot.slane %v333_v3, %v741_v50  ;;  %v398_v35 = vrot.slane %v334_v15, %v741_v50 }
  0x49   :  { %569 = vmatprep.mubr.f32.mxu1 %v66_v21 }
  0x4a   :  { %558 = vmatmul.mubr.f32.gmra.mxu0 %v59_v22 }
  0x4b   :  { %560 = vmatprep.mubr.f32.mxu0 %v60_v23 }
  0x4c   :  { %570 = vmatmul.mubr.f32.gmra.mxu1 %v67_v24 }
  0x4d   :  { %572 = vmatprep.mubr.f32.mxu1 %v68_v25  ;;  %v378_v25 = vrot.slane %v331_v4, %v741_v50 }
  0x4e   :  { %561 = vmatmul.mubr.f32.gmra.mxu0 %v61_v26  ;;  %v366_v26 = vrot.slane %v285_v7, %v741_v50 }
  0x4f   :  { %563 = vmatprep.mubr.f32.mxu0 %v62_v27 }
  0x50   :  { %573 = vmatmul.mubr.f32.gmra.mxu1 %v69_v28 }
  0x51   :  { %575 = vmatprep.mubr.f32.mxu1 %v70_v29 }
  0x52   :  { %564 = vmatmul.mubr.f32.gmra.mxu0 %v63_v30  ;;  %v390_v30 = vrot.slane %v330_v6, %v741_v50 }
  0x54   :  { %576 = vmatmul.mubr.f32.gmra.mxu1 %v71_v31  ;;  %v386_v31 = vrot.slane %v316_v8, %v741_v50 }
 0x106   :  { %v556_v52 = vpop.f32.mrf.mxu0 }
 0x107   :  { %v416_v17 = vadd.f32 %v556_v52, %v342_v60 }
 0x108   :  { %v154_v56 = vpop.f32.mrf.mxu0  ;;  %v568_v57 = vpop.f32.mrf.mxu1 }
 0x109   :  { %v415_v18 = vadd.f32 %v338_v61, %v154_v56  ;;  %v432_v37 = vmax.f32 %v416_v17, 0.0  ;;  %v424_v39 = vadd.f32 %v568_v57, %v374_v13 }
 0x10a   :  { %v559_v63 = vpop.f32.mrf.mxu0  ;;  %v194_v1 = vpop.f32.mrf.mxu1 }
 0x10b   :  { %v418_v23 = vadd.f32 %v559_v63, %v350_v0  ;;  %v423_v27 = vadd.f32 %v370_v9, %v194_v1  ;;  %v431_v38 = vmax.f32 %v415_v18, 0.0  ;;  %v440_v58 = vmax.f32 %v424_v39, 0.0 }
 0x10c   :  { %v164_v10 = vpop.f32.mrf.mxu0  ;;  %v571_v11 = vpop.f32.mrf.mxu1 }
 0x10d   :  { %v417_v40 = vadd.f32 %v346_v19, %v164_v10  ;;  %v434_v43 = vmax.f32 %v418_v23, 0.0  ;;  %v426_v44 = vadd.f32 %v571_v11, %v382_v20  ;;  %v439_v47 = vmax.f32 %v423_v27, 0.0 }
 0x10e   :  { %v562_v21 = vpop.f32.mrf.mxu0  ;;  %v204_v22 = vpop.f32.mrf.mxu1 }
 0x10f   :  { %v420_v24 = vadd.f32 %v562_v21, %v358_v5  ;;  %v425_v49 = vadd.f32 %v378_v25, %v204_v22  ;;  %v433_v59 = vmax.f32 %v417_v40, 0.0  ;;  %v442_v61 = vmax.f32 %v426_v44, 0.0 }
 0x110   :  { %v174_v28 = vpop.f32.mrf.mxu0  ;;  %v574_v29 = vpop.f32.mrf.mxu1 }
 0x111   :  { %v436_v33 = vmax.f32 %v420_v24, 0.0  ;;  %v419_v34 = vadd.f32 %v354_v14, %v174_v28  ;;  %v428_v51 = vadd.f32 %v574_v29, %v390_v30  ;;  %v441_v1 = vmax.f32 %v425_v49, 0.0 }
 0x112   :  { %v565_v41 = vpop.f32.mrf.mxu0  ;;  %v214_v42 = vpop.f32.mrf.mxu1 }
 0x113   :  { %v435_v45 = vmax.f32 %v419_v34, 0.0  ;;  %v422_v46 = vadd.f32 %v565_v41, %v366_v26  ;;  %v448_v48 = vmax.f32 %v432_v37, %v436_v33  ;;  %v427_v56 = vadd.f32 %v386_v31, %v214_v42 }
 0x114   :  { %v184_v52 = vpop.f32.mrf.mxu0  ;;  %v577_v53 = vpop.f32.mrf.mxu1  ;;  %v444_v2 = vmax.f32 %v428_v51, 0.0 }
 0x115   :  { %v447_v54 = vmax.f32 %v431_v38, %v435_v45  ;;  %v438_v55 = vmax.f32 %v422_v46, 0.0  ;;  %v421_v50 = vadd.f32 %v362_v32, %v184_v52  ;;  %v430_v57 = vadd.f32 %v577_v53, %v398_v35 }
 0x116   :  { %v224_v60 = vpop.f32.mrf.mxu1  ;;  %v452_v3 = vmax.f32 %v448_v48, %v440_v58  ;;  %v443_v5 = vmax.f32 %v427_v56, 0.0 }
 0x117   :  { %v450_v62 = vmax.f32 %v434_v43, %v438_v55  ;;  %v451_v63 = vmax.f32 %v447_v54, %v439_v47  ;;  %v437_v0 = vmax.f32 %v421_v50, 0.0  ;;  %v429_v4 = vadd.f32 %v394_v36, %v224_v60 }
 0x118   :  { %v446_v7 = vmax.f32 %v430_v57, 0.0  ;;  %v456_v12 = vmax.f32 %v452_v3, %v444_v2 }
 0x119   :  { %v449_v6 = vmax.f32 %v433_v59, %v437_v0  ;;  %v454_v8 = vmax.f32 %v450_v62, %v442_v61  ;;  %v455_v9 = vmax.f32 %v451_v63, %v443_v5  ;;  %v445_v10 = vmax.f32 %v429_v4, 0.0 }
 0x11b   :  { %v453_v11 = vmax.f32 %v449_v6, %v441_v1  ;;  %v458_v13 = vmax.f32 %v454_v8, %v446_v7  ;;  %v459_v15 = vmax.f32 %v455_v9, %v456_v12 }
 0x11d   :  { %v457_v14 = vmax.f32 %v453_v11, %v445_v10 }
 0x11f   :  { %v460_v16 = vmax.f32 %v457_v14, %v458_v13 }
 0x121   :  { %v461_v17 = vmax.f32 %v459_v15, %v460_v16 }
 0x123   :  { %466 = vst [vmem:[#allocation8] sm:$0xff] %v461_v17 }
 0x124   :  { %690 = shalt.err (!%p687_p5)
}
 0x125   :  { %483 = dma.vmem_to_hbm [thread:$0]  %s481_s2, 128, %s765_s3, [#allocation4]  }
 0x126   :  { %703 = dma.done.wait [#allocation4], 128  }
 0x127   :  { %704 = vsyncadd [#allocation4], 4294967168 }
 0x128   :  { %487 = vsyncpa [#allocation3], 1 }
 0x129   :  { %488 = vsyncpa [#allocation6], 1 }
 0x12a   :  { %489 = vsyncpa [#allocation4], 1 }

</bundles_post_ra>
